<compile_context>
chip_gen: v5e
topology: v5e:2x2
jax: 0.10.0
libtpu: 0.0.40
codegen_flags: <defaults>
</compile_context>

<pallas_src>
import jax
import jax.numpy as jnp
from jax.experimental import pallas as pl
from jax.experimental.pallas import tpu as pltpu


LANE = 128
SUB = 8


def _round_up(x, m):
    return (x + m - 1) // m * m


def _mlp_softmax_kernel(x_ref, w1_ref, b1_ref, w2_ref, b2_ref, w3_ref, b3_ref,
                        o_ref):
    cdt = w1_ref.dtype  # MXU operand dtype (bf16), f32 accumulate
    x = x_ref[...].astype(cdt)

    # Layer 1: Linear + ReLU (real K = in_shape, N padded to 128)
    h1 = jnp.dot(x, w1_ref[...], preferred_element_type=jnp.float32)
    h1 = jnp.maximum(h1 + b1_ref[...], 0.0)

    # Layer 2: Linear + ReLU (padded h1 columns are exactly zero -> exact)
    h2 = jnp.dot(h1.astype(cdt), w2_ref[...], preferred_element_type=jnp.float32)
    h2 = jnp.maximum(h2 + b2_ref[...], 0.0)

    # Layer 3: Linear (padded logit columns carry a -1e30 bias -> exp to 0)
    logits = jnp.dot(h2.astype(cdt), w3_ref[...],
                     preferred_element_type=jnp.float32)
    logits = logits + b3_ref[...]

    # Softmax over dim=1 (last axis), numerically stable, exact divide.
    m = jnp.max(logits, axis=-1, keepdims=True)
    e = jnp.exp(logits - m)
    denom = jnp.sum(e, axis=-1, keepdims=True)
    o_ref[...] = (e / denom).astype(o_ref.dtype)


def prepare_params(params, *, matmul_dtype=jnp.bfloat16):
    """One-time prep: lane-pad N dims to 128, cast weights to the MXU dtype.

    Weights in `params` are stored as (in_features, out_features), i.e. W.T of
    PyTorch layout.  Call once; reuse the result for every forward call.
    """
    w1, b1, w2, b2, w3, b3 = (params["w1"], params["b1"], params["w2"],
                              params["b2"], params["w3"], params["b3"])
    in_shape, hidden = w1.shape
    out_shape = w3.shape[1]
    H_P = _round_up(hidden, LANE)
    OUT_P = _round_up(out_shape, LANE)

    def pad2(a, r, c, fill=0.0):
        out = jnp.full((r, c), fill, a.dtype)
        return out.at[:a.shape[0], :a.shape[1]].set(a)

    return {
        # w1 keeps its real contraction dim (in_shape); only N is padded.
        "w1": pad2(w1, in_shape, H_P).astype(matmul_dtype),
        "w2": pad2(w2, H_P, H_P).astype(matmul_dtype),
        "w3": pad2(w3, H_P, OUT_P).astype(matmul_dtype),
        "b1": pad2(b1, 1, H_P),
        "b2": pad2(b2, 1, H_P),
        "b3": pad2(b3, 1, OUT_P, fill=-1e30),  # padded logits -> exp() == 0
        "dims": (in_shape, hidden, out_shape),
    }


def softmax_mlp_forward(x, prepped, *, block_b=512, out_dtype=jnp.float32):
    """x: (B, in_shape) f32. prepped: output of prepare_params.

    Returns softmax probabilities of shape (B, out_shape), `out_dtype`.
    """
    w1p, b1p, w2p, b2p, w3p, b3p = (prepped["w1"], prepped["b1"], prepped["w2"],
                                    prepped["b2"], prepped["w3"], prepped["b3"])
    in_shape, _, out_shape = prepped["dims"]
    B = x.shape[0]
    assert x.shape[1] == in_shape
    H_P = w1p.shape[1]
    OUT_P = w3p.shape[1]

    # Batch tiling: sublane-align B, then cap the tile at ~half the batch so
    # the grid has >= 2 steps (v7x megacore sharding) whenever B > 8, while
    # never exceeding block_b (~512 keeps per-step overhead amortized and the
    # double-buffered tiles tiny relative to VMEM on all generations).
    B_sub = _round_up(B, SUB)
    half = _round_up((B_sub + 1) // 2, SUB)
    TB = max(SUB, min(block_b, half))
    B_P = _round_up(B_sub, TB)
    if B_P != B:
        xp = jnp.zeros((B_P, in_shape), x.dtype).at[:B].set(x)
    else:
        xp = x

    grid = (B_P // TB,)

    itemsz = lambda a: a.size * a.dtype.itemsize
    flops = 2 * B_P * (in_shape * H_P + H_P * H_P + H_P * OUT_P)
    bytes_accessed = (itemsz(xp) + itemsz(w1p) + itemsz(w2p) + itemsz(w3p)
                      + itemsz(b1p) + itemsz(b2p) + itemsz(b3p)
                      + B_P * OUT_P * jnp.dtype(out_dtype).itemsize)
    cost = pl.CostEstimate(flops=flops,
                           transcendentals=B_P * OUT_P,   # exp
                           bytes_accessed=bytes_accessed)

    out = pl.pallas_call(
        _mlp_softmax_kernel,
        out_shape=jax.ShapeDtypeStruct((B_P, OUT_P), out_dtype),
        grid_spec=pltpu.PrefetchScalarGridSpec(
            num_scalar_prefetch=0,
            grid=grid,
            in_specs=[
                pl.BlockSpec((TB, in_shape), lambda i: (i, 0)),   # x batch tiles, real K
                pl.BlockSpec((in_shape, H_P), lambda i: (0, 0)),  # weights VMEM-resident
                pl.BlockSpec((1, H_P), lambda i: (0, 0)),
                pl.BlockSpec((H_P, H_P), lambda i: (0, 0)),
                pl.BlockSpec((1, H_P), lambda i: (0, 0)),
                pl.BlockSpec((H_P, OUT_P), lambda i: (0, 0)),
                pl.BlockSpec((1, OUT_P), lambda i: (0, 0)),
            ],
            out_specs=pl.BlockSpec((TB, OUT_P), lambda i: (i, 0)),
        ),
        compiler_params=pltpu.CompilerParams(
            dimension_semantics=("parallel",)),
        cost_estimate=cost,
    )(xp, w1p, b1p, w2p, b2p, w3p, b3p)

    return out[:B, :out_shape]


def init_params(key, in_shape, out_shape, hidden_size):
    """Deterministic init mimicking PyTorch Linear default (uniform ±1/sqrt(fan_in)).
    Weights stored as (in_features, out_features) — i.e. W.T of PyTorch layout."""
    ks = jax.random.split(key, 6)

    def lin(kw, kb, fan_in, fan_out):
        bound = 1.0 / jnp.sqrt(fan_in)
        w = jax.random.uniform(kw, (fan_in, fan_out), jnp.float32, -bound, bound)
        b = jax.random.uniform(kb, (1, fan_out), jnp.float32, -bound, bound)
        return w, b

    w1, b1 = lin(ks[0], ks[1], in_shape, hidden_size)
    w2, b2 = lin(ks[2], ks[3], hidden_size, hidden_size)
    w3, b3 = lin(ks[4], ks[5], hidden_size, out_shape)
    return {"w1": w1, "b1": b1, "w2": w2, "b2": b2, "w3": w3, "b3": b3}


if __name__ == "__main__":
    in_shape, out_shape, hidden_size = 32, 16, 64
    batch = 8

    key = jax.random.PRNGKey(0)
    k_x, k_p = jax.random.split(key)
    x = jax.random.normal(k_x, (batch, in_shape), dtype=jnp.float32)
    params = init_params(k_p, in_shape, out_shape, hidden_size)

    # One-time param prep (pad + bf16 cast), then forward.
    prepped = prepare_params(params)
    y = softmax_mlp_forward(x, prepped)
    y = jax.block_until_ready(y)

    # Reference 1: same bf16-operand / f32-accumulate precision as the kernel.
    def ref_matched(x, p, cdt=jnp.bfloat16):
        h1 = jnp.maximum(
            jnp.dot(x.astype(cdt), p["w1"].astype(cdt),
                    preferred_element_type=jnp.float32) + p["b1"], 0.0)
        h2 = jnp.maximum(
            jnp.dot(h1.astype(cdt), p["w2"].astype(cdt),
                    preferred_element_type=jnp.float32) + p["b2"], 0.0)
        logits = jnp.dot(h2.astype(cdt), p["w3"].astype(cdt),
                         preferred_element_type=jnp.float32) + p["b3"]
        return jax.nn.softmax(logits, axis=1)

    # Reference 2: full f32 (checks that bf16 operands don't drift materially).
    def ref_f32(x, p):
        h1 = jnp.maximum(x @ p["w1"] + p["b1"], 0.0)
        h2 = jnp.maximum(h1 @ p["w2"] + p["b2"], 0.0)
        logits = h2 @ p["w3"] + p["b3"]
        return jax.nn.softmax(logits, axis=1)

    y_ref = ref_matched(x, params)
    y_ref_f32 = ref_f32(x, params)

    assert y.shape == (batch, out_shape)
    assert jnp.allclose(y, y_ref, atol=2e-3, rtol=2e-3)
    assert jnp.allclose(y, y_ref_f32, atol=3e-2, rtol=3e-2)
    assert jnp.allclose(jnp.sum(y, axis=1), 1.0, atol=1e-3)

    print("KERNEL_OK")
</pallas_src>

<mosaic_0001>
module attributes {stable_mosaic.version = 11 : i64} {
  func.func @_mlp_softmax_kernel(%arg0: i32, %arg1: memref<8x32xf32, #tpu.memory_space<vmem>>, %arg2: memref<32x128xbf16, #tpu.memory_space<vmem>>, %arg3: memref<1x128xf32, #tpu.memory_space<vmem>>, %arg4: memref<128x128xbf16, #tpu.memory_space<vmem>>, %arg5: memref<1x128xf32, #tpu.memory_space<vmem>>, %arg6: memref<128x128xbf16, #tpu.memory_space<vmem>>, %arg7: memref<1x128xf32, #tpu.memory_space<vmem>>, %arg8: memref<8x128xf32, #tpu.memory_space<vmem>>) attributes {dimension_semantics = [#tpu.dimension_semantics<parallel>], iteration_bounds = array<i64: 1>, scalar_prefetch = 0 : i64, scratch_operands = 0 : i64, tpu.core_type = #tpu.core_type<tc>, window_params = [{transform_indices = @transform_0, window_bounds = array<i64: 8, 32>}, {pipeline_mode = #tpu.pipeline_mode<synchronous>, transform_indices = @transform_1, window_bounds = array<i64: 32, 128>}, {pipeline_mode = #tpu.pipeline_mode<synchronous>, transform_indices = @transform_2, window_bounds = array<i64: 1, 128>}, {pipeline_mode = #tpu.pipeline_mode<synchronous>, transform_indices = @transform_3, window_bounds = array<i64: 128, 128>}, {pipeline_mode = #tpu.pipeline_mode<synchronous>, transform_indices = @transform_4, window_bounds = array<i64: 1, 128>}, {pipeline_mode = #tpu.pipeline_mode<synchronous>, transform_indices = @transform_5, window_bounds = array<i64: 128, 128>}, {pipeline_mode = #tpu.pipeline_mode<synchronous>, transform_indices = @transform_6, window_bounds = array<i64: 1, 128>}, {transform_indices = @transform_7, window_bounds = array<i64: 8, 128>}]} {
    %c0 = arith.constant 0 : index
    %c0_0 = arith.constant 0 : index
    %0 = vector.load %arg1[%c0, %c0_0] : memref<8x32xf32, #tpu.memory_space<vmem>>, vector<8x32xf32>
    %1 = arith.truncf %0 : vector<8x32xf32> to vector<8x32xbf16>
    %c0_1 = arith.constant 0 : index
    %c0_2 = arith.constant 0 : index
    %2 = vector.load %arg2[%c0_1, %c0_2] : memref<32x128xbf16, #tpu.memory_space<vmem>>, vector<32x128xbf16>
    %cst = arith.constant dense<0.000000e+00> : vector<8x128xf32>
    %3 = tpu.matmul %1, %2, %cst {dimension_numbers = #tpu.dot_dimension_numbers<[1], [0], [0], [1], [0, 0, 1, 1], [], []>} : vector<8x32xbf16>, vector<32x128xbf16>, vector<8x128xf32> -> vector<8x128xf32>
    %c0_3 = arith.constant 0 : index
    %c0_4 = arith.constant 0 : index
    %4 = vector.load %arg3[%c0_3, %c0_4] : memref<1x128xf32, #tpu.memory_space<vmem>>, vector<1x128xf32>
    %5 = vector.broadcast %4 : vector<1x128xf32> to vector<8x128xf32>
    %6 = arith.addf %3, %5 : vector<8x128xf32>
    %cst_5 = arith.constant 0.000000e+00 : f32
    %7 = vector.broadcast %cst_5 : f32 to vector<8x128xf32>
    %8 = arith.maximumf %6, %7 : vector<8x128xf32>
    %9 = arith.truncf %8 : vector<8x128xf32> to vector<8x128xbf16>
    %c0_6 = arith.constant 0 : index
    %c0_7 = arith.constant 0 : index
    %10 = vector.load %arg4[%c0_6, %c0_7] : memref<128x128xbf16, #tpu.memory_space<vmem>>, vector<128x128xbf16>
    %cst_8 = arith.constant dense<0.000000e+00> : vector<8x128xf32>
    %11 = tpu.matmul %9, %10, %cst_8 {dimension_numbers = #tpu.dot_dimension_numbers<[1], [0], [0], [1], [0, 0, 1, 1], [], []>} : vector<8x128xbf16>, vector<128x128xbf16>, vector<8x128xf32> -> vector<8x128xf32>
    %c0_9 = arith.constant 0 : index
    %c0_10 = arith.constant 0 : index
    %12 = vector.load %arg5[%c0_9, %c0_10] : memref<1x128xf32, #tpu.memory_space<vmem>>, vector<1x128xf32>
    %13 = vector.broadcast %12 : vector<1x128xf32> to vector<8x128xf32>
    %14 = arith.addf %11, %13 : vector<8x128xf32>
    %cst_11 = arith.constant 0.000000e+00 : f32
    %15 = vector.broadcast %cst_11 : f32 to vector<8x128xf32>
    %16 = arith.maximumf %14, %15 : vector<8x128xf32>
    %17 = arith.truncf %16 : vector<8x128xf32> to vector<8x128xbf16>
    %c0_12 = arith.constant 0 : index
    %c0_13 = arith.constant 0 : index
    %18 = vector.load %arg6[%c0_12, %c0_13] : memref<128x128xbf16, #tpu.memory_space<vmem>>, vector<128x128xbf16>
    %cst_14 = arith.constant dense<0.000000e+00> : vector<8x128xf32>
    %19 = tpu.matmul %17, %18, %cst_14 {dimension_numbers = #tpu.dot_dimension_numbers<[1], [0], [0], [1], [0, 0, 1, 1], [], []>} : vector<8x128xbf16>, vector<128x128xbf16>, vector<8x128xf32> -> vector<8x128xf32>
    %c0_15 = arith.constant 0 : index
    %c0_16 = arith.constant 0 : index
    %20 = vector.load %arg7[%c0_15, %c0_16] : memref<1x128xf32, #tpu.memory_space<vmem>>, vector<1x128xf32>
    %21 = vector.broadcast %20 : vector<1x128xf32> to vector<8x128xf32>
    %22 = arith.addf %19, %21 : vector<8x128xf32>
    %cst_17 = arith.constant dense<0xFF800000> : vector<8xf32>
    %23 = vector.multi_reduction <maximumf>, %22, %cst_17 [1] : vector<8x128xf32> to vector<8xf32>
    %24 = vector.shape_cast %23 : vector<8xf32> to vector<8x1xf32>
    %25 = vector.broadcast %24 : vector<8x1xf32> to vector<8x128xf32>
    %26 = arith.subf %22, %25 : vector<8x128xf32>
    %27 = math.exp %26 : vector<8x128xf32>
    %cst_18 = arith.constant dense<0.000000e+00> : vector<8xf32>
    %28 = vector.multi_reduction <add>, %27, %cst_18 [1] : vector<8x128xf32> to vector<8xf32>
    %29 = vector.shape_cast %28 : vector<8xf32> to vector<8x1xf32>
    %30 = vector.broadcast %29 : vector<8x1xf32> to vector<8x128xf32>
    %31 = arith.divf %27, %30 : vector<8x128xf32>
    %c0_19 = arith.constant 0 : index
    %c0_20 = arith.constant 0 : index
    %32 = vector.load %arg8[%c0_19, %c0_20] : memref<8x128xf32, #tpu.memory_space<vmem>>, vector<8x128xf32>
    tpu.vector_store %arg8[%c0_19, %c0_20], %31 {strides = array<i32>} : memref<8x128xf32, #tpu.memory_space<vmem>>, vector<8x128xf32>,
    return
  }
  func.func @transform_0(%arg0: i32) -> (i32, i32) {
    %c0_i32 = arith.constant 0 : i32
    %c0_i32_0 = arith.constant 0 : i32
    return %arg0, %c0_i32 : i32, i32
  }
  func.func @transform_1(%arg0: i32) -> (i32, i32) {
    %c0_i32 = arith.constant 0 : i32
    %c0_i32_0 = arith.constant 0 : i32
    %c0_i32_1 = arith.constant 0 : i32
    return %c0_i32, %c0_i32_0 : i32, i32
  }
  func.func @transform_2(%arg0: i32) -> (i32, i32) {
    %c0_i32 = arith.constant 0 : i32
    %c0_i32_0 = arith.constant 0 : i32
    %c0_i32_1 = arith.constant 0 : i32
    return %c0_i32, %c0_i32_0 : i32, i32
  }
  func.func @transform_3(%arg0: i32) -> (i32, i32) {
    %c0_i32 = arith.constant 0 : i32
    %c0_i32_0 = arith.constant 0 : i32
    %c0_i32_1 = arith.constant 0 : i32
    return %c0_i32, %c0_i32_0 : i32, i32
  }
  func.func @transform_4(%arg0: i32) -> (i32, i32) {
    %c0_i32 = arith.constant 0 : i32
    %c0_i32_0 = arith.constant 0 : i32
    %c0_i32_1 = arith.constant 0 : i32
    return %c0_i32, %c0_i32_0 : i32, i32
  }
  func.func @transform_5(%arg0: i32) -> (i32, i32) {
    %c0_i32 = arith.constant 0 : i32
    %c0_i32_0 = arith.constant 0 : i32
    %c0_i32_1 = arith.constant 0 : i32
    return %c0_i32, %c0_i32_0 : i32, i32
  }
  func.func @transform_6(%arg0: i32) -> (i32, i32) {
    %c0_i32 = arith.constant 0 : i32
    %c0_i32_0 = arith.constant 0 : i32
    %c0_i32_1 = arith.constant 0 : i32
    return %c0_i32, %c0_i32_0 : i32, i32
  }
  func.func @transform_7(%arg0: i32) -> (i32, i32) {
    %c0_i32 = arith.constant 0 : i32
    %c0_i32_0 = arith.constant 0 : i32
    return %arg0, %c0_i32 : i32, i32
  }
}

</mosaic_0001>

<bundles_post_ra>
// kernel: tpu_custom_call.1
= control target key start
LH: loop header
LB: loop body
LE: loop exit
PB: predicated region body
PF: predicated region fallthrough
CT: control target
= control target key end

     0   :  { %12 = vsyncpa [#allocation3], 0  ;;  %s640_s0 = inlined_call_operand.hbm [shape: f32[8,32], index: 0, kind: input, shape index: {}]   ;;  %s641_s1 = inlined_call_operand.hbm [shape: bf16[32,128], index: 1, kind: input, shape index: {}]   ;;  %s642_s2 = inlined_call_operand.vmem [shape: f32[1,128], index: 2, kind: input, shape index: {}]   ;;  %s643_s3 = inlined_call_operand.hbm [shape: bf16[128,128], index: 3, kind: input, shape index: {}]   ;;  %s644_s4 = inlined_call_operand.vmem [shape: f32[1,128], index: 4, kind: input, shape index: {}]   ;;  %s645_s5 = inlined_call_operand.hbm [shape: bf16[128,128], index: 5, kind: input, shape index: {}]   ;;  %s646_s6 = inlined_call_operand.vmem [shape: f32[1,128], index: 6, kind: input, shape index: {}]   ;;  %s647_s7 = inlined_call_operand.hbm [shape: f32[8,128], index: 7, kind: output, shape index: {}]  }
   0x1   :  { %13 = vsyncpa [#allocation6], 0 }
   0x2   :  { %14 = vsyncpa [#allocation9], 0  ;;  %s31_s26 = sshll.u32 %s641_s1, 4  ;;  %s32_s26 = int_to_ptr.hbm [resolvable:$true] %s31_s26 }
   0x3   :  { %15 = vsyncpa [#allocation4], 0  ;;  %s569_s27 = smov [#allocation5]   ;;  %s21_s8 = sshll.u32 %s640_s0, 4  ;;  %s22_s8 = int_to_ptr.hbm [resolvable:$true] %s21_s8 }
   0x4   :  { %s33_s28 = sshll.u32 %s569_s27, 4  ;;  %s570_s9 = smov 64   ;;  %s34_s28 = int_to_ptr.vmem [resolvable:$true] %s33_s28 }
   0x5   :  { %s571_s10 = smov 4   ;;  %s572_s11 = smov [#allocation2]  }
   0x6   :  { %39 = dma.hbm_to_vmem [thread:$0]  %s32_s26, 256, %s34_s28, [#allocation6], %s570_s9, %s570_s9, %s571_s10  }
   0x7   :  { %s23_s12 = sshll.u32 %s572_s11, 4  ;;  %s46_s15 = sshll.u32 %s643_s3, 4  ;;  %s24_s12 = int_to_ptr.vmem [resolvable:$true] %s23_s12  ;;  %s47_s15 = int_to_ptr.hbm [resolvable:$true] %s46_s15 }
   0x8   :  { %26 = dma.hbm_to_vmem [thread:$0]  %s22_s8, 128, %s24_s12, [#allocation3]  }
   0x9   :  { %s61_s17 = sshll.u32 %s645_s5, 4  ;;  %s573_s18 = smov [#allocation7]   ;;  %s62_s17 = int_to_ptr.hbm [resolvable:$true] %s61_s17 }
   0xa   :  { %s48_s19 = sshll.u32 %s573_s18, 4  ;;  %s574_s0 = smov [#allocation8]   ;;  %s49_s19 = int_to_ptr.vmem [resolvable:$true] %s48_s19 }
   0xb   :  { %54 = dma.hbm_to_vmem [thread:$0]  %s47_s15, 1024, %s49_s19, [#allocation6], %s570_s9, %s570_s9, %s571_s10  }
   0xc   :  { %s63_s20 = sshll.u32 %s574_s0, 4  ;;  %s64_s20 = int_to_ptr.vmem [resolvable:$true] %s63_s20 }
   0xd   :  { %69 = dma.hbm_to_vmem [thread:$0]  %s62_s17, 1024, %s64_s20, [#allocation9], %s570_s9, %s570_s9, %s571_s10  }
   0xe   :  { %561 = dma.done.wait [#allocation3], 128  }
   0xf   :  { %562 = vsyncadd [#allocation3], 4294967168 }
  0x10   :  { %563 = dma.done.wait [#allocation6], 1280  }
  0x11   :  { %564 = vsyncadd [#allocation6], 4294966016 }
  0x12   :  { %565 = dma.done.wait [#allocation9], 1024  }
  0x13   :  { %566 = vsyncadd [#allocation9], 4294966272  ;;  %v410_v0 = vld [vmem:[#allocation5 + $0x8] sm:$0xff]  ;;  %v409_v2 = vld [vmem:[#allocation5] sm:$0xff]  ;;  %vm111_vm0 = vcmask 261120   ;;  %s324_s26 = sshll.u32 %s647_s7, 4  ;;  %s325_s26 = int_to_ptr.hbm [resolvable:$true] %s324_s26 }
  0x14   :  { %v418_v1 = vld [vmem:[#allocation7 + $0x38] sm:$0xff]  ;;  %121 = vmatpush.bf16.msra.mxu0 %v410_v0  ;;  %v89_v3 = vld [vmem:[#allocation2] sm:$0xff]  ;;  %v417_v4 = vld [vmem:[#allocation7 + $0x30] sm:$0xff] }
  0x15   :  { %198 = vmatpush.bf16.msra.mxu1 %v418_v1  ;;  %v90_v5 = vpack.c.bf16 %v89_v3, %v89_v3  ;;  %v416_v6 = vld [vmem:[#allocation7 + $0x28] sm:$0xff]  ;;  %v415_v7 = vld [vmem:[#allocation7 + $0x20] sm:$0xff]  ;;  %v414_v8 = vld [vmem:[#allocation7 + $0x18] sm:$0xff] }
  0x16   :  { %v413_v9 = vld [vmem:[#allocation7 + $0x10] sm:$0xff]  ;;  %v412_v10 = vld [vmem:[#allocation7 + $0x8] sm:$0xff]  ;;  %v411_v11 = vld [vmem:[#allocation7] sm:$0xff] }
  0x17   :  { %v426_v12 = vld [vmem:[#allocation8 + $0x38] sm:$0xff]  ;;  %v425_v13 = vld [vmem:[#allocation8 + $0x30] sm:$0xff]  ;;  %v424_v14 = vld [vmem:[#allocation8 + $0x28] sm:$0xff] }
  0x18   :  { %122 = vmatpush.bf16.msra.mxu0 %v409_v2  ;;  %281 = vmatpush.bf16.msra.mxu2 %v426_v12  ;;  %v423_v15 = vld [vmem:[#allocation8 + $0x20] sm:$0xff]  ;;  %v422_v16 = vld [vmem:[#allocation8 + $0x18] sm:$0xff]  ;;  %v421_v17 = vld [vmem:[#allocation8 + $0x10] sm:$0xff] }
  0x19   :  { %199 = vmatpush.bf16.msra.mxu1 %v417_v4  ;;  %v434_v18 = vld [vmem:[%s642_s2] ss:$0 sm:$0xff]  ;;  %v419_v25 = vld [vmem:[#allocation8] sm:$0xff] }
  0x1a   :  { %v420_v24 = vld [vmem:[#allocation8 + $0x8] sm:$0xff] }
  0x1b   :  { %344 = vmatmul.msk.bf16.vlgmr.msra.gmra.mxu0 %vm111_vm0, %v90_v5  ;;  %v435_v26 = vld [vmem:[%s644_s4] ss:$0 sm:$0xff]  ;;  %s575_s4 = smov [#allocation10]  }
  0x1c   :  { %282 = vmatpush.bf16.msra.mxu2 %v425_v13  ;;  %v436_v32 = vld [vmem:[%s646_s6] ss:$0 sm:$0xff]  ;;  %s322_s6 = sshll.u32 %s575_s4, 4  ;;  %s323_s6 = int_to_ptr.vmem [resolvable:$true] %s322_s6 }
  0x1d   :  { %200 = vmatpush.bf16.msra.mxu1 %v416_v6 }
  0x20   :  { %283 = vmatpush.bf16.msra.mxu2 %v424_v14 }
  0x21   :  { %201 = vmatpush.bf16.msra.mxu1 %v415_v7 }
  0x24   :  { %284 = vmatpush.bf16.msra.mxu2 %v423_v15 }
  0x25   :  { %202 = vmatpush.bf16.msra.mxu1 %v414_v8 }
  0x28   :  { %285 = vmatpush.bf16.msra.mxu2 %v422_v16 }
  0x29   :  { %203 = vmatpush.bf16.msra.mxu1 %v413_v9 }
  0x2c   :  { %286 = vmatpush.bf16.msra.mxu2 %v421_v17 }
  0x2d   :  { %204 = vmatpush.bf16.msra.mxu1 %v412_v10 }
  0x30   :  { %287 = vmatpush.bf16.msra.mxu2 %v420_v24 }
  0x31   :  { %205 = vmatpush.bf16.msra.mxu1 %v411_v11 }
  0x34   :  { %288 = vmatpush.bf16.msra.mxu2 %v419_v25 }
  0x98   :  { %v124_v19 = vpop.f32.mrf.mxu0 }
  0x99   :  { %v125_v20 = vadd.f32 %v434_v18, %v124_v19 }
  0x9b   :  { %v128_v21 = vmax.f32 %v125_v20, 0.0 }
  0x9d   :  { %v129_v22 = vpack.c.bf16 %v128_v21, %v128_v21 }
  0x9f   :  { %206 = vmatmul.bf16.vlgmr.msra.gmra.mxu1 %v129_v22 }
  0xa0   :  { %v126_v23 = vpop.f32.mrf.mxu0 }
 0x11c   :  { %v207_v27 = vpop.f32.mrf.mxu1 }
 0x11d   :  { %v208_v28 = vadd.f32 %v435_v26, %v207_v27 }
 0x11f   :  { %v211_v29 = vmax.f32 %v208_v28, 0.0 }
 0x121   :  { %v212_v30 = vpack.c.bf16 %v211_v29, %v211_v29 }
 0x123   :  { %289 = vmatmul.bf16.vlgmr.msra.gmra.mxu2 %v212_v30 }
 0x124   :  { %v209_v31 = vpop.f32.mrf.mxu1 }
 0x1a6   :  { %v290_v33 = vpop.f32.mrf.mxu2 }
 0x1a7   :  { %v291_v34 = vadd.f32 %v436_v32, %v290_v33 }
 0x1a9   :  { %294 = vmax.xlane.f32.xlu0 %v291_v34 }
 0x1ae   :  { %v292_v35 = vpop.f32.mrf.mxu2 }
 0x21c   :  { %v295_v36 = vpop.xlane.xlu0 %294 }
 0x21d   :  { %v296_v37 = vsub.f32 %v291_v34, %v295_v36 }
 0x21f   :  { %v297_v38 = vmul.f32 1.442695, %v296_v37 }
 0x221   :  { %437 = vpow2.f32 %v297_v38 }
 0x227   :  { %v438_v39 = vpop.eup %437 }
 0x228   :  { %299 = vadd.xlane.f32.xlu0 %v438_v39 }
 0x29b   :  { %v300_v40 = vpop.xlane.xlu0 %299 }
 0x29c   :  { %439 = vrcp.f32 %v300_v40  ;;  %v312_v44 = vand.u32 2147483648, %v300_v40  ;;  %v310_v46 = vand.u32 2147483647, %v300_v40  ;;  %vm306_vm2 = vweird.f32 %v300_v40 }
 0x29e   :  { %v313_v48 = vor.u32 1.1754944e-38, %v312_v44  ;;  %vm311_vm4 = vcmp.eq.f32.partialorder %v310_v46, 8.507059e+37 }
 0x2a2   :  { %v440_v41 = vpop.eup %439 }
 0x2a3   :  { %v302_v42 = vmul.f32 %v440_v41, %v300_v40  ;;  %vm307_vm1 = vweird.f32 %v440_v41 }
 0x2a4   :  { %vm308_vm3 = vmor %vm306_vm2, %vm307_vm1 }
 0x2a5   :  { %v303_v43 = vsub.f32 1.0, %v302_v42 }
 0x2a7   :  { %v304_v45 = vmul.f32 %v440_v41, %v303_v43 }
 0x2a9   :  { %v305_v47 = vadd.f32 %v440_v41, %v304_v45 }
 0x2ab   :  { %v309_v49 = vsel %vm308_vm3, %v440_v41, %v305_v47 }
 0x2ac   :  { %v314_v50 = vsel %vm311_vm4, %v313_v48, %v309_v49 }
 0x2ad   :  { %v315_v51 = vmul.f32 %v438_v39, %v314_v50 }
 0x2af   :  { %316 = vst [vmem:[#allocation10] sm:$0xff] %v315_v51 }
 0x2b0   :  { %327 = dma.vmem_to_hbm [thread:$0]  %s323_s6, 128, %s325_s26, [#allocation4]  }
 0x2b1   :  { %567 = dma.done.wait [#allocation4], 128  }
 0x2b2   :  { %568 = vsyncadd [#allocation4], 4294967168 }
 0x2b3   :  { %332 = vsyncpa [#allocation3], 1 }
 0x2b4   :  { %333 = vsyncpa [#allocation6], 1 }
 0x2b5   :  { %334 = vsyncpa [#allocation9], 1 }
 0x2b6   :  { %335 = vsyncpa [#allocation4], 1 }

</bundles_post_ra>
